<compile_context>
chip_gen: v6e
topology: v6e:2x2x1
jax: 0.10.0
libtpu: 0.0.40
codegen_flags: <defaults>
</compile_context>

<pallas_src>
import functools
import math

import jax
import jax.numpy as jnp
from jax import lax
from jax.experimental import pallas as pl
from jax.experimental.pallas import tpu as pltpu


# -----------------------------------------------------------------------------
# helpers / hardware gating
# -----------------------------------------------------------------------------
def _round_up(x, m):
    return ((x + m - 1) // m) * m


def _largest_divisor_leq(n, m):
    m = max(1, min(int(n), int(m)))
    while n % m:
        m -= 1
    return m


_NEG_INF = -0.7 * float(jnp.finfo(jnp.float32).max)


@functools.lru_cache(maxsize=None)
def _vmem_budget():
    """Per-core scoped-VMEM budget (bytes), gated by TPU generation.

    v5e/v6e expose 128 MiB of VMEM per core -> ~96 MiB budget; v7x has only
    64 MiB per TensorCore -> cap near 48 MiB; unknown hardware -> ~48 MiB.
    """
    cap = 0
    try:
        cap = int(getattr(pltpu.get_tpu_info(), "vmem_capacity_bytes", 0) or 0)
    except Exception:
        cap = 0
    if cap <= 0:
        try:
            kind = jax.devices()[0].device_kind.lower()
            cap = (64 if "v7" in kind else 128) * 1024 * 1024
        except Exception:
            cap = 64 * 1024 * 1024
    return int(max(32 * 1024 * 1024, min(96 * 1024 * 1024, (cap * 3) // 4)))


def _matmul_tiles():
    # 128 MiB parts (v5e/v6e): bigger K tiles move the mem-bound KAN matmuls
    # toward the HBM roofline; 64 MiB/TC (v7x): keep the 512 ceiling.
    if _vmem_budget() >= 64 * 1024 * 1024:
        return 512, 512, 1024
    return 512, 512, 512


def _attn_blocks():
    # (block_q, block_k); larger kv blocks on 128 MiB parts.
    if _vmem_budget() >= 64 * 1024 * 1024:
        return 128, 512
    return 128, 256


# -----------------------------------------------------------------------------
# Pallas tiled matmul (MXU) — used for the fused KANLinear projections
# -----------------------------------------------------------------------------
def _matmul_kernel(a_ref, b_ref, o_ref, acc_ref):
    @pl.when(pl.program_id(2) == 0)
    def _():
        acc_ref[...] = jnp.zeros_like(acc_ref)

    # Native-dtype MXU inputs (bf16 inputs stay bf16), f32 accumulation.
    acc_ref[...] += jnp.dot(a_ref[...], b_ref[...],
                            preferred_element_type=jnp.float32)

    @pl.when(pl.program_id(2) == pl.num_programs(2) - 1)
    def _():
        o_ref[...] = acc_ref[...].astype(o_ref.dtype)


def pallas_matmul(a, b, *, tiles=None):
    """C = A @ B with f32 accumulation on the MXU."""
    M, K = a.shape
    K2, N = b.shape
    assert K == K2
    out_dtype = jnp.promote_types(a.dtype, b.dtype)
    tile_m, tile_n, tile_k = tiles if tiles is not None else _matmul_tiles()

    # Full-extent blocks when a dim fits in one tile: no (8,128) constraint
    # and no padded HBM copies.  Otherwise aligned tiles + zero padding.
    tm = M if M <= tile_m else tile_m
    tn = N if N <= tile_n else tile_n
    tk = K if K <= tile_k else tile_k
    Mp, Np, Kp = _round_up(M, tm), _round_up(N, tn), _round_up(K, tk)

    # Keep >=2 blocks along the parallel axes when it costs no extra padding,
    # so v7x's two TensorCores both get work (harmless on single-TC parts).
    if (Mp // tm) * (Np // tn) < 2 and tm >= 16 and tm % 16 == 0:
        tm //= 2

    a_p = a if (Mp == M and Kp == K) else jnp.pad(a, ((0, Mp - M), (0, Kp - K)))
    b_p = b if (Kp == K and Np == N) else jnp.pad(b, ((0, Kp - K), (0, Np - N)))

    out = pl.pallas_call(
        _matmul_kernel,
        out_shape=jax.ShapeDtypeStruct((Mp, Np), out_dtype),
        grid_spec=pltpu.PrefetchScalarGridSpec(
            num_scalar_prefetch=0,
            grid=(Mp // tm, Np // tn, Kp // tk),
            in_specs=[
                pl.BlockSpec((tm, tk), lambda i, j, k: (i, k)),
                pl.BlockSpec((tk, tn), lambda i, j, k: (k, j)),
            ],
            out_specs=pl.BlockSpec((tm, tn), lambda i, j, k: (i, j)),
            scratch_shapes=[pltpu.VMEM((tm, tn), jnp.float32)],
        ),
        compiler_params=pltpu.CompilerParams(
            dimension_semantics=("parallel", "parallel", "arbitrary"),
            vmem_limit_bytes=_vmem_budget(),
        ),
    )(a_p, b_p)
    return out[:M, :N] if (Mp != M or Np != N) else out


# -----------------------------------------------------------------------------
# Pallas flash-attention kernel: softmax(q @ k^T * scale) @ v
# -----------------------------------------------------------------------------
def _flash_attn_kernel(q_ref, k_ref, v_ref, o_ref, m_sc, l_sc, acc_sc, *,
                       scale, kv_len, block_k, needs_kv_mask):
    ki = pl.program_id(2)

    @pl.when(ki == 0)
    def _():
        m_sc[...] = jnp.full_like(m_sc, _NEG_INF)
        l_sc[...] = jnp.zeros_like(l_sc)
        acc_sc[...] = jnp.zeros_like(acc_sc)

    # Fold the softmax scale into the (small) q block instead of the scores:
    # (G, bq, hd) multiply instead of a (G, bq, bk) one every kv step.
    q = q_ref[0] * scale
    s = jnp.einsum('gqd,gkd->gqk', q, k_ref[0],
                   preferred_element_type=jnp.float32)

    if needs_kv_mask:                      # traced only when kv is zero-padded
        col = ki * block_k + lax.broadcasted_iota(jnp.int32, s.shape, 2)
        s = jnp.where(col < kv_len, s, _NEG_INF)

    m_prev = m_sc[...]
    m_new = jnp.maximum(m_prev, jnp.max(s, axis=-1, keepdims=True))
    alpha = jnp.exp(m_prev - m_new)
    p = jnp.exp(s - m_new)
    l_sc[...] = alpha * l_sc[...] + jnp.sum(p, axis=-1, keepdims=True)
    acc_sc[...] = alpha * acc_sc[...] + jnp.einsum(
        'gqk,gkd->gqd', p.astype(v_ref.dtype), v_ref[0],
        preferred_element_type=jnp.float32)
    m_sc[...] = m_new

    @pl.when(ki == pl.num_programs(2) - 1)
    def _():
        inv_l = pl.reciprocal(l_sc[...], approx=True)   # EUP slot, ~free
        out = acc_sc[...] * inv_l                       # (G, bq, hd) f32
        g_total, _, hd = acc_sc.shape
        # Lane-dense epilogue store: heads packed along the 128-lane axis of
        # the output block (single dense DMA back to HBM).
        for g in range(g_total):
            o_ref[0, :, g * hd:(g + 1) * hd] = out[g].astype(o_ref.dtype)


def pallas_attention(q, k, v, scale, *, blocks=None):
    """q, k, v: (BH, N, hd).  Returns softmax(q k^T * scale) v, shape (BH, N, hd)."""
    BH, N, hd = q.shape
    block_q, block_k = blocks if blocks is not None else _attn_blocks()

    bq = N if N <= block_q else block_q
    bk = N if N <= block_k else block_k
    Nq, Nk = _round_up(N, bq), _round_up(N, bk)

    # Batch G (batch, head) pairs per grid step so the grouped width G*hd
    # approaches the 128-lane vreg width: amortizes grid-step overhead,
    # fattens DMAs and enables the lane-dense output store.
    G = _largest_divisor_leq(BH, max(1, 128 // max(1, hd)))
    while G > 1 and G * bq * bk * 4 > 8 * 1024 * 1024:   # keep score tensor modest
        G = _largest_divisor_leq(BH, G // 2)
    if (BH // G) * (Nq // bq) < 2 and G > 1:             # feed both v7x TCs
        G = _largest_divisor_leq(BH, max(1, G // 2))
    BHG = BH // G

    # Skip padding entirely when shapes are already block-aligned.
    if Nq != N:
        q = jnp.pad(q, ((0, 0), (0, Nq - N), (0, 0)))
    if Nk != N:
        k = jnp.pad(k, ((0, 0), (0, Nk - N), (0, 0)))
        v = jnp.pad(v, ((0, 0), (0, Nk - N), (0, 0)))

    q_g = q.reshape(BHG, G, Nq, hd)
    k_g = k.reshape(BHG, G, Nk, hd)
    v_g = v.reshape(BHG, G, Nk, hd)

    kernel = functools.partial(_flash_attn_kernel, scale=float(scale),
                               kv_len=N, block_k=bk, needs_kv_mask=(Nk != N))

    out = pl.pallas_call(
        kernel,
        out_shape=jax.ShapeDtypeStruct((BHG, Nq, G * hd), q.dtype),
        grid_spec=pltpu.PrefetchScalarGridSpec(
            num_scalar_prefetch=0,
            grid=(BHG, Nq // bq, Nk // bk),
            in_specs=[
                pl.BlockSpec((1, G, bq, hd), lambda b, qi, ki: (b, 0, qi, 0)),
                pl.BlockSpec((1, G, bk, hd), lambda b, qi, ki: (b, 0, ki, 0)),
                pl.BlockSpec((1, G, bk, hd), lambda b, qi, ki: (b, 0, ki, 0)),
            ],
            out_specs=pl.BlockSpec((1, bq, G * hd), lambda b, qi, ki: (b, qi, 0)),
            scratch_shapes=[
                pltpu.VMEM((G, bq, 1), jnp.float32),    # running max
                pltpu.VMEM((G, bq, 1), jnp.float32),    # running denom
                pltpu.VMEM((G, bq, hd), jnp.float32),   # output accumulator
            ],
        ),
        compiler_params=pltpu.CompilerParams(
            dimension_semantics=("parallel", "parallel", "arbitrary"),
            vmem_limit_bytes=_vmem_budget(),
        ),
    )(q_g, k_g, v_g)

    # Wrapper-side layout plumbing back to (BH, N, hd) — cheap XLA reshapes.
    out = out.reshape(BHG, Nq, G, hd).transpose(0, 2, 1, 3).reshape(BH, Nq, hd)
    return out[:, :N, :] if Nq != N else out


# -----------------------------------------------------------------------------
# KANLinear / BatchNorm1d / KAN_GPT (forward only; matmuls go through Pallas)
# -----------------------------------------------------------------------------
def _make_kan_grid(in_features, grid_size, spline_order, grid_range=(-1.0, 1.0)):
    h = (grid_range[1] - grid_range[0]) / grid_size
    g = jnp.arange(-spline_order, grid_size + spline_order + 1,
                   dtype=jnp.float32) * h + grid_range[0]
    return jnp.tile(g[None, :], (in_features, 1))   # (in, G + 2k + 1)


def _b_splines(x2d, grid, spline_order):
    # x2d: (N, in); grid: (in, G + 2k + 1) -> (N, in, G + k)   (Cox–de Boor)
    x = x2d[..., None]
    bases = ((x >= grid[:, :-1]) & (x < grid[:, 1:])).astype(x.dtype)
    for k in range(1, spline_order + 1):
        bases = ((x - grid[:, : -(k + 1)])
                 / (grid[:, k:-1] - grid[:, : -(k + 1)]) * bases[..., :-1]
                 + (grid[:, k + 1:] - x)
                 / (grid[:, k + 1:] - grid[:, 1:-k]) * bases[..., 1:])
    return bases


def _init_kan_linear(key, in_features, out_features, grid_size, spline_order):
    kb, ks = jax.random.split(key)
    base_weight = jax.random.normal(kb, (out_features, in_features),
                                    jnp.float32) / math.sqrt(in_features)
    spline_weight = jax.random.normal(
        ks, (out_features, in_features, grid_size + spline_order),
        jnp.float32) * (0.1 / math.sqrt(in_features))
    # Fused base+spline projection weight: one MXU matmul per layer instead
    # of two, with the base/spline sum falling out of the f32 accumulator.
    fused_weight_t = jnp.concatenate(
        [base_weight, spline_weight.reshape(out_features, -1)], axis=1).T
    return dict(base_weight=base_weight, spline_weight=spline_weight,
                fused_weight_t=fused_weight_t,
                grid=_make_kan_grid(in_features, grid_size, spline_order),
                spline_order=spline_order)


def _kan_linear_apply(p, x2d, matmul):
    n = x2d.shape[0]
    bas = _b_splines(x2d, p["grid"], p["spline_order"])        # (N, in, G+k)
    lhs = jnp.concatenate([jax.nn.silu(x2d), bas.reshape(n, -1)], axis=-1)
    return matmul(lhs, p["fused_weight_t"])                    # base + spline


def _init_batchnorm(key, features):
    kw, kb, km, kv = jax.random.split(key, 4)
    return dict(
        weight=1.0 + 0.05 * jax.random.normal(kw, (features,), jnp.float32),
        bias=0.05 * jax.random.normal(kb, (features,), jnp.float32),
        running_mean=0.05 * jax.random.normal(km, (features,), jnp.float32),
        running_var=1.0 + 0.05 * jax.random.uniform(kv, (features,), jnp.float32),
    )


def _batchnorm_apply(p, x2d, eps=1e-5):
    # TODO(synk): eval-mode BatchNorm1d only (running stats); training-mode
    # batch statistics / running-stat updates are not implemented.
    inv = lax.rsqrt(p["running_var"] + eps)
    return (x2d - p["running_mean"]) * inv * p["weight"] + p["bias"]


def init_kan_gpt(key, width, grid_size=3):
    # NB: the reference module passes spline_order=grid (both default 3).
    layers = []
    for in_f, out_f in zip(width, width[1:]):
        key, k1, k2 = jax.random.split(key, 3)
        layers.append(("kan", _init_kan_linear(k1, in_f, out_f,
                                               grid_size=grid_size,
                                               spline_order=grid_size)))
        layers.append(("bn", _init_batchnorm(k2, out_f)))
    return layers


def kan_gpt_apply(layers, x, matmul):
    # mirrors KAN_GPT.forward: (B, C, T) -> (B*C, T) -> layers -> (B, C, U)
    B, C, T = x.shape
    h = x.reshape(-1, T)
    for kind, p in layers:
        h = _kan_linear_apply(p, h, matmul) if kind == "kan" else _batchnorm_apply(p, h)
    return h.reshape(B, C, h.shape[-1])


# -----------------------------------------------------------------------------
# Attention module (forward-pass port)
# -----------------------------------------------------------------------------
class Attention:
    def __init__(self, dim, heads=8, dropout=0.1, *, key=None):
        assert dim % heads == 0
        self.dim = dim
        self.heads = heads
        self.scale = dim ** (-0.5)        # NB: module scales by full `dim`, not head_dim
        self.dropout = dropout
        if key is None:
            key = jax.random.PRNGKey(0)
        k1, k2 = jax.random.split(key)
        self.to_qkv = init_kan_gpt(k1, [dim, 3 * dim])
        self.nn1 = init_kan_gpt(k2, [dim, dim])

    def __call__(self, x, mask=None, *, use_pallas="auto"):
        # TODO(synk): the optional attention `mask` path is not implemented.
        assert mask is None
        b, n, d = x.shape
        h, hd = self.heads, d // self.heads

        if use_pallas == "auto":
            # Tiny problems: pad/launch overhead beats any tiling win — let
            # XLA's fused path handle them.
            use_pallas = (b * n * d) >= (1 << 16)

        if use_pallas:
            matmul = pallas_matmul
        else:
            matmul = lambda a, bb: jnp.dot(a, bb, precision=lax.Precision.HIGHEST)

        qkv = kan_gpt_apply(self.to_qkv, x, matmul)            # (b, n, 3*dim)
        q, k, v = jnp.split(qkv, 3, axis=-1)

        def split_heads(t):                                    # 'b n (h d) -> b h n d'
            return t.reshape(b, n, h, hd).transpose(0, 2, 1, 3)

        q, k, v = map(split_heads, (q, k, v))

        if use_pallas:
            out = pallas_attention(q.reshape(b * h, n, hd),
                                   k.reshape(b * h, n, hd),
                                   v.reshape(b * h, n, hd),
                                   self.scale).reshape(b, h, n, hd)
        else:
            dots = jnp.einsum('bhid,bhjd->bhij', q, k,
                              precision=lax.Precision.HIGHEST) * self.scale
            attn = jax.nn.softmax(dots, axis=-1)
            out = jnp.einsum('bhij,bhjd->bhid', attn, v,
                             precision=lax.Precision.HIGHEST)

        out = out.transpose(0, 2, 1, 3).reshape(b, n, d)       # 'b h n d -> b n (h d)'
        out = kan_gpt_apply(self.nn1, out, matmul)
        # TODO(synk): do1 (Dropout) is the identity in eval mode; train-mode dropout not applied.
        return out


# -----------------------------------------------------------------------------
# demo / self-test
# -----------------------------------------------------------------------------
if __name__ == "__main__":
    key = jax.random.PRNGKey(0)
    kx, kp = jax.random.split(key)

    B, N, DIM, HEADS = 2, 64, 64, 8          # batch=2, seq=64, hidden=64, 8 heads
    x = jax.random.normal(kx, (B, N, DIM), jnp.float32)

    attn = Attention(DIM, heads=HEADS, key=kp)

    out = attn(x, use_pallas=True)           # force the Pallas kernels
    out = jax.block_until_ready(out)

    ref = attn(x, use_pallas=False)          # pure-JAX reference (same params)
    ref = jax.block_until_ready(ref)

    assert out.shape == (B, N, DIM)
    assert not bool(jnp.any(jnp.isnan(out)))
    max_err = float(jnp.max(jnp.abs(out - ref)))
    assert jnp.allclose(out, ref, atol=2e-2, rtol=2e-2), f"mismatch vs reference: {max_err}"

    print("KERNEL_OK")
</pallas_src>

<mosaic_0001>
module attributes {stable_mosaic.version = 11 : i64} {
  func.func @_matmul_kernel(%arg0: i32, %arg1: i32, %arg2: i32, %arg3: memref<64x448xf32, #tpu.memory_space<vmem>>, %arg4: memref<448x192xf32, #tpu.memory_space<vmem>>, %arg5: memref<64x192xf32, #tpu.memory_space<vmem>>, %arg6: memref<64x192xf32, #tpu.memory_space<vmem>>) attributes {dimension_semantics = [#tpu.dimension_semantics<parallel>, #tpu.dimension_semantics<parallel>, #tpu.dimension_semantics<arbitrary>], iteration_bounds = array<i64: 2, 1, 1>, scalar_prefetch = 0 : i64, scratch_operands = 1 : i64, tpu.core_type = #tpu.core_type<tc>, window_params = [{transform_indices = @transform_0, window_bounds = array<i64: 64, 448>}, {transform_indices = @transform_1, window_bounds = array<i64: 448, 192>}, {transform_indices = @transform_2, window_bounds = array<i64: 64, 192>}]} {
    %c0_i32 = arith.constant 0 : i32
    %0 = arith.cmpi eq, %arg2, %c0_i32 : i32
    %1 = arith.extui %0 : i1 to i32
    %c0_i32_0 = arith.constant 0 : i32
    %2 = arith.cmpi ne, %1, %c0_i32_0 : i32
    scf.if %2 {
      %cst_10 = arith.constant 0.000000e+00 : f32
      %12 = vector.broadcast %cst_10 : f32 to vector<64x192xf32>
      %c0_11 = arith.constant 0 : index
      %c0_12 = arith.constant 0 : index
      %13 = vector.load %arg6[%c0_11, %c0_12] : memref<64x192xf32, #tpu.memory_space<vmem>>, vector<64x192xf32>
      tpu.vector_store %arg6[%c0_11, %c0_12], %12 {strides = array<i32>} : memref<64x192xf32, #tpu.memory_space<vmem>>, vector<64x192xf32>,
    } else {
    }
    %c0 = arith.constant 0 : index
    %c0_1 = arith.constant 0 : index
    %3 = vector.load %arg6[%c0, %c0_1] : memref<64x192xf32, #tpu.memory_space<vmem>>, vector<64x192xf32>
    %c0_2 = arith.constant 0 : index
    %c0_3 = arith.constant 0 : index
    %4 = vector.load %arg3[%c0_2, %c0_3] : memref<64x448xf32, #tpu.memory_space<vmem>>, vector<64x448xf32>
    %c0_4 = arith.constant 0 : index
    %c0_5 = arith.constant 0 : index
    %5 = vector.load %arg4[%c0_4, %c0_5] : memref<448x192xf32, #tpu.memory_space<vmem>>, vector<448x192xf32>
    %cst = arith.constant dense<0.000000e+00> : vector<64x192xf32>
    %6 = tpu.matmul %4, %5, %cst {dimension_numbers = #tpu.dot_dimension_numbers<[1], [0], [0], [1], [0, 0, 1, 1], [], []>} : vector<64x448xf32>, vector<448x192xf32>, vector<64x192xf32> -> vector<64x192xf32>
    %7 = arith.addf %3, %6 : vector<64x192xf32>
    %c0_6 = arith.constant 0 : index
    %c0_7 = arith.constant 0 : index
    %8 = vector.load %arg6[%c0_6, %c0_7] : memref<64x192xf32, #tpu.memory_space<vmem>>, vector<64x192xf32>
    tpu.vector_store %arg6[%c0_6, %c0_7], %7 {strides = array<i32>} : memref<64x192xf32, #tpu.memory_space<vmem>>, vector<64x192xf32>,
    %c0_i32_8 = arith.constant 0 : i32
    %9 = arith.cmpi eq, %arg2, %c0_i32_8 : i32
    %10 = arith.extui %9 : i1 to i32
    %c0_i32_9 = arith.constant 0 : i32
    %11 = arith.cmpi ne, %10, %c0_i32_9 : i32
    scf.if %11 {
      %c0_10 = arith.constant 0 : index
      %c0_11 = arith.constant 0 : index
      %12 = vector.load %arg6[%c0_10, %c0_11] : memref<64x192xf32, #tpu.memory_space<vmem>>, vector<64x192xf32>
      %c0_12 = arith.constant 0 : index
      %c0_13 = arith.constant 0 : index
      %13 = vector.load %arg5[%c0_12, %c0_13] : memref<64x192xf32, #tpu.memory_space<vmem>>, vector<64x192xf32>
      tpu.vector_store %arg5[%c0_12, %c0_13], %12 {strides = array<i32>} : memref<64x192xf32, #tpu.memory_space<vmem>>, vector<64x192xf32>,
    } else {
    }
    return
  }
  func.func @transform_0(%arg0: i32, %arg1: i32, %arg2: i32) -> (i32, i32) {
    %c0_i32 = arith.constant 0 : i32
    return %arg0, %arg2 : i32, i32
  }
  func.func @transform_1(%arg0: i32, %arg1: i32, %arg2: i32) -> (i32, i32) {
    %c0_i32 = arith.constant 0 : i32
    return %arg2, %arg1 : i32, i32
  }
  func.func @transform_2(%arg0: i32, %arg1: i32, %arg2: i32) -> (i32, i32) {
    %c0_i32 = arith.constant 0 : i32
    return %arg0, %arg1 : i32, i32
  }
}

</mosaic_0001>

<bundles_post_ra>
// kernel: tpu_custom_call.1
= control target key start
LH: loop header
LB: loop body
LE: loop exit
PB: predicated region body
PF: predicated region fallthrough
CT: control target
= control target key end

     0   :  { %s941_s9 = smov 0   ;;  %s943_s10 = smov 0   ;;  %s1411_s0 = inlined_call_operand.vmem [shape: f32[128,448], index: 0, kind: input, shape index: {}]   ;;  %s1412_s1 = inlined_call_operand.vmem [shape: f32[448,192], index: 1, kind: input, shape index: {}]   ;;  %s1413_s2 = inlined_call_operand.vmem [shape: f32[128,192], index: 2, kind: output, shape index: {}]  }
   0x1   :  { %s945_s11 = smov 0  }
   0x2 LB: > { %s31_s12 = sadd.s32 1, %s919_s10  ;;  %p857_p0 = scmp.ge.s32.totalorder %s923_s11, 1  ;;  %s923_s11 = sphi %s945_s11, %s12_s11   ;;  %s919_s10 = sphi %s943_s10, %s1416_s10   ;;  %s915_s9 = sphi %s941_s9, %s1415_s9  }
   0x3   : > { %p33_p1 = scmp.ge.s32.totalorder %s31_s12, 2  ;;  %p161_p2 = scmp.lt.s32.totalorder %s923_s11, 3 }
   0x5   : > { %s1418_s12 = smov (%p33_p1, %s31_s12), 0  ;;  %p162_p3 = pnand %p857_p0, %p161_p2 }
   0x6   : > { %s858_s3 = sshll.u32 (!%p162_p3), %s915_s9, 3 }
   0x7   : > { %165 = sbr.rel (%p162_p3) target bundleno = 313 (0x139), region = 28  ;;  %p1189_p4 = scmp.lt.s32.totalorder (!%p162_p3), %s858_s3, 15 }
   0xc   : > { %v339_v0 = vld [vmem:[%s1412_s1 + $0xf8] sm:$0xff]  ;;  %v338_v1 = vld [vmem:[%s1412_s1 + $0xf0] sm:$0xff]  ;;  %v337_v2 = vld [vmem:[%s1412_s1 + $0xe8] sm:$0xff]  ;;  %s1420_s3 = smov (!%p1189_p4, %s858_s3), 15  ;;  %vm244_vm0 = vcmask 523264  }
   0xd   : > { %445 = vmatprep.subr.mxu0 %v339_v0  ;;  %v336_v3 = vld [vmem:[%s1412_s1 + $0xe0] sm:$0xff]  ;;  %v335_v4 = vld [vmem:[%s1412_s1 + $0xd8] sm:$0xff]  ;;  %v334_v5 = vld [vmem:[%s1412_s1 + $0xd0] sm:$0xff]  ;;  %s874_s29 = sshll.u32 %s1420_s3, 5 }
   0xe   : > { %446 = vmatpush1.msra.mxu0 %v338_v1  ;;  %v333_v6 = vld [vmem:[%s1412_s1 + $0xc8] sm:$0xff]  ;;  %v332_v7 = vld [vmem:[%s1412_s1 + $0xc0] sm:$0xff]  ;;  %v403_v8 = vld [vmem:[%s1412_s1 + $0x2f8] sm:$0xff]  ;;  %s1269_s20 = scalar_lea.vmem %s1411_s0, %s874_s29 }
   0xf   : > { %447 = vmatprep.subr.mxu0 %v337_v2  ;;  %v402_v9 = vld [vmem:[%s1412_s1 + $0x2f0] sm:$0xff]  ;;  %v331_v10 = vld [vmem:[%s1412_s1 + $0xb8] sm:$0xff]  ;;  %558 = vmatprep.subr.mxu1 %v403_v8  ;;  %v401_v11 = vld [vmem:[%s1412_s1 + $0x2e8] sm:$0xff] }
  0x10   : > { %448 = vmatpush1.msra.mxu0 %v336_v3  ;;  %v330_v12 = vld [vmem:[%s1412_s1 + $0xb0] sm:$0xff]  ;;  %559 = vmatpush1.msra.mxu1 %v402_v9  ;;  %v400_v13 = vld [vmem:[%s1412_s1 + $0x2e0] sm:$0xff]  ;;  %v399_v14 = vld [vmem:[%s1412_s1 + $0x2d8] sm:$0xff] }
  0x11   : > { %449 = vmatprep.subr.mxu0 %v335_v4  ;;  %v329_v15 = vld [vmem:[%s1412_s1 + $0xa8] sm:$0xff]  ;;  %560 = vmatprep.subr.mxu1 %v401_v11  ;;  %v398_v16 = vld [vmem:[%s1412_s1 + $0x2d0] sm:$0xff]  ;;  %v328_v17 = vld [vmem:[%s1412_s1 + $0xa0] sm:$0xff] }
  0x12   : > { %450 = vmatpush1.msra.mxu0 %v334_v5  ;;  %561 = vmatpush1.msra.mxu1 %v400_v13  ;;  %v397_v18 = vld [vmem:[%s1412_s1 + $0x2c8] sm:$0xff]  ;;  %v327_v19 = vld [vmem:[%s1412_s1 + $0x98] sm:$0xff]  ;;  %v396_v20 = vld [vmem:[%s1412_s1 + $0x2c0] sm:$0xff] }
  0x13   : > { %451 = vmatprep.subr.mxu0 %v333_v6  ;;  %562 = vmatprep.subr.mxu1 %v399_v14  ;;  %v326_v21 = vld [vmem:[%s1412_s1 + $0x90] sm:$0xff]  ;;  %v395_v22 = vld [vmem:[%s1412_s1 + $0x2b8] sm:$0xff]  ;;  %v325_v23 = vld [vmem:[%s1412_s1 + $0x88] sm:$0xff] }
  0x14   : > { %452 = vmatpush1.msra.mxu0 %v332_v7  ;;  %563 = vmatpush1.msra.mxu1 %v398_v16  ;;  %v394_v24 = vld [vmem:[%s1412_s1 + $0x2b0] sm:$0xff]  ;;  %v324_v25 = vld [vmem:[%s1412_s1 + $0x80] sm:$0xff]  ;;  %v393_v26 = vld [vmem:[%s1412_s1 + $0x2a8] sm:$0xff] }
  0x15   : > { %453 = vmatprep.subr.mxu0 %v331_v10  ;;  %564 = vmatprep.subr.mxu1 %v397_v18  ;;  %v323_v27 = vld [vmem:[%s1412_s1 + $0x78] sm:$0xff]  ;;  %v392_v28 = vld [vmem:[%s1412_s1 + $0x2a0] sm:$0xff]  ;;  %v322_v29 = vld [vmem:[%s1412_s1 + $0x70] sm:$0xff] }
  0x16   : > { %454 = vmatpush1.msra.mxu0 %v330_v12  ;;  %565 = vmatpush1.msra.mxu1 %v396_v20  ;;  %v391_v30 = vld [vmem:[%s1412_s1 + $0x298] sm:$0xff]  ;;  %v321_v31 = vld [vmem:[%s1412_s1 + $0x68] sm:$0xff]  ;;  %v390_v32 = vld [vmem:[%s1412_s1 + $0x290] sm:$0xff] }
  0x17   : > { %455 = vmatprep.subr.mxu0 %v329_v15  ;;  %566 = vmatprep.subr.mxu1 %v395_v22  ;;  %v320_v33 = vld [vmem:[%s1412_s1 + $0x60] sm:$0xff]  ;;  %v389_v34 = vld [vmem:[%s1412_s1 + $0x288] sm:$0xff]  ;;  %v319_v35 = vld [vmem:[%s1412_s1 + $0x58] sm:$0xff] }
  0x18   : > { %456 = vmatpush1.msra.mxu0 %v328_v17  ;;  %567 = vmatpush1.msra.mxu1 %v394_v24  ;;  %v388_v36 = vld [vmem:[%s1412_s1 + $0x280] sm:$0xff]  ;;  %v318_v37 = vld [vmem:[%s1412_s1 + $0x50] sm:$0xff]  ;;  %v387_v38 = vld [vmem:[%s1412_s1 + $0x278] sm:$0xff] }
  0x19   : > { %457 = vmatprep.subr.mxu0 %v327_v19  ;;  %568 = vmatprep.subr.mxu1 %v393_v26  ;;  %v317_v39 = vld [vmem:[%s1412_s1 + $0x48] sm:$0xff]  ;;  %v386_v40 = vld [vmem:[%s1412_s1 + $0x270] sm:$0xff]  ;;  %v316_v41 = vld [vmem:[%s1412_s1 + $0x40] sm:$0xff] }
  0x1a   : > { %458 = vmatpush1.msra.mxu0 %v326_v21  ;;  %569 = vmatpush1.msra.mxu1 %v392_v28  ;;  %v385_v42 = vld [vmem:[%s1412_s1 + $0x268] sm:$0xff]  ;;  %v315_v43 = vld [vmem:[%s1412_s1 + $0x38] sm:$0xff]  ;;  %v384_v44 = vld [vmem:[%s1412_s1 + $0x260] sm:$0xff] }
  0x1b   : > { %459 = vmatprep.subr.mxu0 %v325_v23  ;;  %570 = vmatprep.subr.mxu1 %v391_v30  ;;  %v314_v45 = vld [vmem:[%s1412_s1 + $0x30] sm:$0xff]  ;;  %v383_v46 = vld [vmem:[%s1412_s1 + $0x258] sm:$0xff]  ;;  %v313_v47 = vld [vmem:[%s1412_s1 + $0x28] sm:$0xff] }
  0x1c   : > { %460 = vmatpush1.msra.mxu0 %v324_v25  ;;  %571 = vmatpush1.msra.mxu1 %v390_v32  ;;  %v382_v48 = vld [vmem:[%s1412_s1 + $0x250] sm:$0xff]  ;;  %v312_v49 = vld [vmem:[%s1412_s1 + $0x20] sm:$0xff]  ;;  %v381_v50 = vld [vmem:[%s1412_s1 + $0x248] sm:$0xff] }
  0x1d   : > { %461 = vmatprep.subr.mxu0 %v323_v27  ;;  %572 = vmatprep.subr.mxu1 %v389_v34  ;;  %v311_v51 = vld [vmem:[%s1412_s1 + $0x18] sm:$0xff]  ;;  %v380_v52 = vld [vmem:[%s1412_s1 + $0x240] sm:$0xff]  ;;  %v310_v53 = vld [vmem:[%s1412_s1 + $0x10] sm:$0xff] }
  0x1e   : > { %462 = vmatpush1.msra.mxu0 %v322_v29  ;;  %573 = vmatpush1.msra.mxu1 %v388_v36  ;;  %v379_v54 = vld [vmem:[%s1412_s1 + $0x238] sm:$0xff]  ;;  %v309_v55 = vld [vmem:[%s1412_s1 + $0x8] sm:$0xff]  ;;  %v378_v56 = vld [vmem:[%s1412_s1 + $0x230] sm:$0xff] }
  0x1f   : > { %463 = vmatprep.subr.mxu0 %v321_v31  ;;  %574 = vmatprep.subr.mxu1 %v387_v38  ;;  %v308_v57 = vld [vmem:[%s1412_s1] sm:$0xff]  ;;  %v377_v58 = vld [vmem:[%s1412_s1 + $0x228] sm:$0xff]  ;;  %v371_v59 = vld [vmem:[%s1412_s1 + $0x1f8] sm:$0xff] }
  0x20   : > { %464 = vmatpush1.msra.mxu0 %v320_v33  ;;  %575 = vmatpush1.msra.mxu1 %v386_v40  ;;  %v376_v60 = vld [vmem:[%s1412_s1 + $0x220] sm:$0xff]  ;;  %v370_v61 = vld [vmem:[%s1412_s1 + $0x1f0] sm:$0xff]  ;;  %v375_v62 = vld [vmem:[%s1412_s1 + $0x218] sm:$0xff] }
  0x21   : > { %465 = vmatprep.subr.mxu0 %v319_v35  ;;  %576 = vmatprep.subr.mxu1 %v385_v42  ;;  %v369_v63 = vld [vmem:[%s1412_s1 + $0x1e8] sm:$0xff]  ;;  %v374_v0 = vld [vmem:[%s1412_s1 + $0x210] sm:$0xff]  ;;  %v368_v1 = vld [vmem:[%s1412_s1 + $0x1e0] sm:$0xff] }
  0x22   : > { %466 = vmatpush1.msra.mxu0 %v318_v37  ;;  %577 = vmatpush1.msra.mxu1 %v384_v44  ;;  %v373_v2 = vld [vmem:[%s1412_s1 + $0x208] sm:$0xff]  ;;  %v367_v3 = vld [vmem:[%s1412_s1 + $0x1d8] sm:$0xff]  ;;  %v372_v4 = vld [vmem:[%s1412_s1 + $0x200] sm:$0xff] }
  0x23   : > { %467 = vmatprep.subr.mxu0 %v317_v39  ;;  %578 = vmatprep.subr.mxu1 %v383_v46  ;;  %v366_v5 = vld [vmem:[%s1412_s1 + $0x1d0] sm:$0xff]  ;;  %v419_v6 = vld [vmem:[%s1412_s1 + $0x378] sm:$0xff]  ;;  %v365_v7 = vld [vmem:[%s1412_s1 + $0x1c8] sm:$0xff] }
  0x24   : > { %468 = vmatpush1.msra.mxu0 %v316_v41  ;;  %579 = vmatpush1.msra.mxu1 %v382_v48  ;;  %v418_v8 = vld [vmem:[%s1412_s1 + $0x370] sm:$0xff]  ;;  %v364_v9 = vld [vmem:[%s1412_s1 + $0x1c0] sm:$0xff]  ;;  %v417_v10 = vld [vmem:[%s1412_s1 + $0x368] sm:$0xff] }
  0x25   : > { %469 = vmatprep.subr.mxu0 %v315_v43  ;;  %580 = vmatprep.subr.mxu1 %v381_v50  ;;  %v363_v11 = vld [vmem:[%s1412_s1 + $0x1b8] sm:$0xff]  ;;  %v416_v12 = vld [vmem:[%s1412_s1 + $0x360] sm:$0xff]  ;;  %v362_v13 = vld [vmem:[%s1412_s1 + $0x1b0] sm:$0xff] }
  0x26   : > { %470 = vmatpush1.msra.mxu0 %v314_v45  ;;  %581 = vmatpush1.msra.mxu1 %v380_v52  ;;  %v415_v14 = vld [vmem:[%s1412_s1 + $0x358] sm:$0xff]  ;;  %v361_v15 = vld [vmem:[%s1412_s1 + $0x1a8] sm:$0xff]  ;;  %v414_v16 = vld [vmem:[%s1412_s1 + $0x350] sm:$0xff] }
  0x27   : > { %471 = vmatprep.subr.mxu0 %v313_v47  ;;  %582 = vmatprep.subr.mxu1 %v379_v54  ;;  %v360_v17 = vld [vmem:[%s1412_s1 + $0x1a0] sm:$0xff]  ;;  %v413_v18 = vld [vmem:[%s1412_s1 + $0x348] sm:$0xff]  ;;  %v359_v19 = vld [vmem:[%s1412_s1 + $0x198] sm:$0xff] }
  0x28   : > { %472 = vmatpush1.msra.mxu0 %v312_v49  ;;  %583 = vmatpush1.msra.mxu1 %v378_v56  ;;  %v412_v20 = vld [vmem:[%s1412_s1 + $0x340] sm:$0xff]  ;;  %v358_v21 = vld [vmem:[%s1412_s1 + $0x190] sm:$0xff]  ;;  %v411_v22 = vld [vmem:[%s1412_s1 + $0x338] sm:$0xff] }
  0x29   : > { %473 = vmatprep.subr.mxu0 %v311_v51  ;;  %584 = vmatprep.subr.mxu1 %v377_v58  ;;  %v357_v23 = vld [vmem:[%s1412_s1 + $0x188] sm:$0xff]  ;;  %v410_v24 = vld [vmem:[%s1412_s1 + $0x330] sm:$0xff]  ;;  %v356_v25 = vld [vmem:[%s1412_s1 + $0x180] sm:$0xff] }
  0x2a   : > { %474 = vmatpush1.msra.mxu0 %v310_v53  ;;  %585 = vmatpush1.msra.mxu1 %v376_v60  ;;  %v409_v26 = vld [vmem:[%s1412_s1 + $0x328] sm:$0xff]  ;;  %v355_v27 = vld [vmem:[%s1412_s1 + $0x178] sm:$0xff]  ;;  %v408_v28 = vld [vmem:[%s1412_s1 + $0x320] sm:$0xff] }
  0x2b   : > { %475 = vmatprep.subr.mxu0 %v309_v55  ;;  %586 = vmatprep.subr.mxu1 %v375_v62  ;;  %v354_v29 = vld [vmem:[%s1412_s1 + $0x170] sm:$0xff]  ;;  %v407_v30 = vld [vmem:[%s1412_s1 + $0x318] sm:$0xff]  ;;  %v353_v31 = vld [vmem:[%s1412_s1 + $0x168] sm:$0xff] }
  0x2c   : > { %476 = vmatpush1.msra.mxu0 %v308_v57  ;;  %587 = vmatpush1.msra.mxu1 %v374_v0  ;;  %v406_v32 = vld [vmem:[%s1412_s1 + $0x310] sm:$0xff]  ;;  %v352_v33 = vld [vmem:[%s1412_s1 + $0x160] sm:$0xff]  ;;  %v405_v34 = vld [vmem:[%s1412_s1 + $0x308] sm:$0xff] }
  0x2d   : > { %477 = vmatprep.subr.mxu0 %v371_v59  ;;  %588 = vmatprep.subr.mxu1 %v373_v2  ;;  %v351_v35 = vld [vmem:[%s1412_s1 + $0x158] sm:$0xff]  ;;  %v404_v36 = vld [vmem:[%s1412_s1 + $0x300] sm:$0xff]  ;;  %v350_v37 = vld [vmem:[%s1412_s1 + $0x150] sm:$0xff] }
  0x2e   : > { %478 = vmatpush2.msra.mxu0 %v370_v61  ;;  %589 = vmatpush1.msra.mxu1 %v372_v4  ;;  %v279_v38 = vld [vmem:[%s1269_s20 + $0x18] sm:$0xff]  ;;  %v349_v39 = vld [vmem:[%s1412_s1 + $0x148] sm:$0xff]  ;;  %v278_v40 = vld [vmem:[%s1269_s20 + $0x10] sm:$0xff] }
  0x2f   : > { %479 = vmatprep.subr.mxu0 %v369_v63  ;;  %606 = vmatprep.subr.mxu1 %v419_v6  ;;  %v348_v41 = vld [vmem:[%s1412_s1 + $0x140] sm:$0xff]  ;;  %v277_v42 = vld [vmem:[%s1269_s20 + $0x8] sm:$0xff]  ;;  %v347_v43 = vld [vmem:[%s1412_s1 + $0x138] sm:$0xff] }
  0x30   : > { %480 = vmatpush2.msra.mxu0 %v368_v1  ;;  %607 = vmatpush2.msra.mxu1 %v418_v8  ;;  %v283_v44 = vld [vmem:[%s1269_s20 + $0x38] sm:$0xff]  ;;  %v346_v45 = vld [vmem:[%s1412_s1 + $0x130] sm:$0xff]  ;;  %v345_v46 = vld [vmem:[%s1412_s1 + $0x128] sm:$0xff] }
  0x31   : > { %481 = vmatprep.subr.mxu0 %v367_v3  ;;  %608 = vmatprep.subr.mxu1 %v417_v10  ;;  %v282_v47 = vld [vmem:[%s1269_s20 + $0x30] sm:$0xff]  ;;  %v344_v48 = vld [vmem:[%s1412_s1 + $0x120] sm:$0xff]  ;;  %v287_v49 = vld [vmem:[%s1269_s20 + $0x58] sm:$0xff] }
  0x32   : > { %482 = vmatpush2.msra.mxu0 %v366_v5  ;;  %609 = vmatpush2.msra.mxu1 %v416_v12  ;;  %v343_v50 = vld [vmem:[%s1412_s1 + $0x118] sm:$0xff]  ;;  %v342_v51 = vld [vmem:[%s1412_s1 + $0x110] sm:$0xff]  ;;  %v341_v52 = vld [vmem:[%s1412_s1 + $0x108] sm:$0xff] }
  0x33   : > { %483 = vmatprep.subr.mxu0 %v365_v7  ;;  %610 = vmatprep.subr.mxu1 %v415_v14  ;;  %v286_v53 = vld [vmem:[%s1269_s20 + $0x50] sm:$0xff]  ;;  %v340_v54 = vld [vmem:[%s1412_s1 + $0x100] sm:$0xff]  ;;  %v291_v55 = vld [vmem:[%s1269_s20 + $0x78] sm:$0xff] }
  0x34   : > { %484 = vmatpush2.msra.mxu0 %v364_v9  ;;  %611 = vmatpush2.msra.mxu1 %v414_v16  ;;  %v276_v56 = vld [vmem:[%s1269_s20] sm:$0xff]  ;;  %v281_v57 = vld [vmem:[%s1269_s20 + $0x28] sm:$0xff]  ;;  %v290_v58 = vld [vmem:[%s1269_s20 + $0x70] sm:$0xff]  ;;  %v925_v16 = vmov 0.0  }
  0x35   : > { %485 = vmatprep.subr.mxu0 %v363_v11  ;;  %612 = vmatprep.subr.mxu1 %v413_v18  ;;  %v295_v59 = vld [vmem:[%s1269_s20 + $0x98] sm:$0xff]  ;;  %v280_v60 = vld [vmem:[%s1269_s20 + $0x20] sm:$0xff]  ;;  %v285_v61 = vld [vmem:[%s1269_s20 + $0x48] sm:$0xff]  ;;  %245 = vst.msk [vmem:[#allocation2 + $0x8] sm:$0xff] %vm244_vm0, %v925_v16 }
  0x36   : > { %486 = vmatpush2.msra.mxu0 %v362_v13  ;;  %613 = vmatpush2.msra.mxu1 %v412_v20  ;;  %v294_v62 = vld [vmem:[%s1269_s20 + $0x90] sm:$0xff]  ;;  %v299_v63 = vld [vmem:[%s1269_s20 + $0xb8] sm:$0xff]  ;;  %v284_v0 = vld [vmem:[%s1269_s20 + $0x40] sm:$0xff]  ;;  %247 = vst.msk [vmem:[#allocation2 + $0x18] sm:$0xff] %vm244_vm0, %v925_v16 }
  0x37   : > { %487 = vmatprep.subr.mxu0 %v361_v15  ;;  %614 = vmatprep.subr.mxu1 %v411_v22  ;;  %v289_v1 = vld [vmem:[%s1269_s20 + $0x68] sm:$0xff]  ;;  %v298_v2 = vld [vmem:[%s1269_s20 + $0xb0] sm:$0xff]  ;;  %v303_v3 = vld [vmem:[%s1269_s20 + $0xd8] sm:$0xff]  ;;  %249 = vst.msk [vmem:[#allocation2 + $0x28] sm:$0xff] %vm244_vm0, %v925_v16 }
  0x38   : > { %488 = vmatpush2.msra.mxu0 %v360_v17  ;;  %615 = vmatpush2.msra.mxu1 %v410_v24  ;;  %v288_v4 = vld [vmem:[%s1269_s20 + $0x60] sm:$0xff]  ;;  %v293_v5 = vld [vmem:[%s1269_s20 + $0x88] sm:$0xff]  ;;  %v302_v6 = vld [vmem:[%s1269_s20 + $0xd0] sm:$0xff]  ;;  %251 = vst.msk [vmem:[#allocation2 + $0x38] sm:$0xff] %vm244_vm0, %v925_v16 }
  0x39   : > { %489 = vmatprep.subr.mxu0 %v359_v19  ;;  %616 = vmatprep.subr.mxu1 %v409_v26  ;;  %v307_v7 = vld [vmem:[%s1269_s20 + $0xf8] sm:$0xff]  ;;  %v292_v8 = vld [vmem:[%s1269_s20 + $0x80] sm:$0xff]  ;;  %v297_v9 = vld [vmem:[%s1269_s20 + $0xa8] sm:$0xff]  ;;  %253 = vst.msk [vmem:[#allocation2 + $0x48] sm:$0xff] %vm244_vm0, %v925_v16 }
  0x3a   : > { %490 = vmatpush2.msra.mxu0 %v358_v21  ;;  %617 = vmatpush2.msra.mxu1 %v408_v28  ;;  %v306_v10 = vld [vmem:[%s1269_s20 + $0xf0] sm:$0xff]  ;;  %v296_v11 = vld [vmem:[%s1269_s20 + $0xa0] sm:$0xff]  ;;  %v301_v12 = vld [vmem:[%s1269_s20 + $0xc8] sm:$0xff]  ;;  %255 = vst.msk [vmem:[#allocation2 + $0x58] sm:$0xff] %vm244_vm0, %v925_v16 }
  0x3b   : > { %491 = vmatprep.subr.mxu0 %v357_v23  ;;  %618 = vmatprep.subr.mxu1 %v407_v30  ;;  %v300_v13 = vld [vmem:[%s1269_s20 + $0xc0] sm:$0xff]  ;;  %v305_v14 = vld [vmem:[%s1269_s20 + $0xe8] sm:$0xff]  ;;  %257 = vst.msk [vmem:[#allocation2 + $0x68] sm:$0xff] %vm244_vm0, %v925_v16  ;;  %259 = vst.msk [vmem:[#allocation2 + $0x78] sm:$0xff] %vm244_vm0, %v925_v16 }
  0x3c   : > { %492 = vmatpush2.msra.mxu0 %v356_v25  ;;  %619 = vmatpush2.msra.mxu1 %v406_v32  ;;  %v304_v15 = vld [vmem:[%s1269_s20 + $0xe0] sm:$0xff]  ;;  %s875_s20 = sshll.u32 %s1420_s3, 4  ;;  %v261_v25 = vld [vmem:[#allocation2 + $0x8] sm:$0xff] }
  0x3d   : > { %493 = vmatprep.subr.mxu0 %v355_v27  ;;  %620 = vmatprep.subr.mxu1 %v405_v34  ;;  %s1368_s30 = scalar_lea.vmem %s1413_s2, %s875_s20 }
  0x3e   : > { %494 = vmatpush2.msra.mxu0 %v354_v29  ;;  %621 = vmatpush2.msra.mxu1 %v404_v36 }
  0x3f   : > { %495 = vmatprep.subr.mxu0 %v353_v31  ;;  %864 = vmatprep.mubr.msk.f32.mxu1 %vm244_vm0, %v279_v38 }
  0x40   : > { %496 = vmatpush2.msra.mxu0 %v352_v33  ;;  %623 = vmatmul.mubr.f32.vlgmr.msra.gmra.mxu1 %v278_v40  ;;  %v263_v33 = vld [vmem:[#allocation2 + $0x18] sm:$0xff] }
  0x41   : > { %497 = vmatprep.subr.mxu0 %v351_v35  ;;  %509 = vmatprep.mubr.f32.mxu0 %v277_v42 }
  0x42   : > { %498 = vmatpush2.msra.mxu0 %v350_v37  ;;  %865 = vmatprep.mubr.msk.f32.mxu1 %vm244_vm0, %v283_v44 }
  0x43   : > { %499 = vmatprep.subr.mxu0 %v349_v39 }
  0x44   : > { %500 = vmatpush2.msra.mxu0 %v348_v41  ;;  %629 = vmatmul.mubr.f32.gmra.mxu1 %v282_v47  ;;  %v265_v41 = vld [vmem:[#allocation2 + $0x28] sm:$0xff] }
  0x45   : > { %501 = vmatprep.subr.mxu0 %v347_v43  ;;  %866 = vmatprep.mubr.msk.f32.mxu1 %vm244_vm0, %v287_v49  ;;  %v267_v49 = vld [vmem:[#allocation2 + $0x38] sm:$0xff] }
  0x46   : > { %502 = vmatpush2.msra.mxu0 %v346_v45 }
  0x47   : > { %503 = vmatprep.subr.mxu0 %v345_v46 }
  0x48   : > { %504 = vmatpush2.msra.mxu0 %v344_v48  ;;  %635 = vmatmul.mubr.f32.gmra.mxu1 %v286_v53 }
  0x49   : > { %505 = vmatprep.subr.mxu0 %v343_v50  ;;  %867 = vmatprep.mubr.msk.f32.mxu1 %vm244_vm0, %v291_v55 }
  0x4a   : > { %506 = vmatpush2.msra.mxu0 %v342_v51 }
  0x4b   : > { %507 = vmatprep.subr.mxu0 %v341_v52 }
  0x4c   : > { %508 = vmatpush2.msra.mxu0 %v340_v54  ;;  %641 = vmatmul.mubr.f32.gmra.mxu1 %v290_v58 }
  0x4d   : > { %510 = vmatmul.mubr.f32.vlgmr.msra.gmra.mxu0 %v276_v56  ;;  %868 = vmatprep.mubr.msk.f32.mxu1 %vm244_vm0, %v295_v59 }
  0x4e   : > { %515 = vmatprep.mubr.f32.mxu0 %v281_v57  ;;  %v269_v57 = vld [vmem:[#allocation2 + $0x48] sm:$0xff] }
  0x50   : > { %647 = vmatmul.mubr.f32.gmra.mxu1 %v294_v62 }
  0x51   : > { %516 = vmatmul.mubr.f32.gmra.mxu0 %v280_v60  ;;  %869 = vmatprep.mubr.msk.f32.mxu1 %vm244_vm0, %v299_v63 }
  0x52   : > { %521 = vmatprep.mubr.f32.mxu0 %v285_v61 }
  0x54   : > { %653 = vmatmul.mubr.f32.gmra.mxu1 %v298_v2 }
  0x55   : > { %522 = vmatmul.mubr.f32.gmra.mxu0 %v284_v0  ;;  %870 = vmatprep.mubr.msk.f32.mxu1 %vm244_vm0, %v303_v3 }
  0x56   : > { %527 = vmatprep.mubr.f32.mxu0 %v289_v1  ;;  %v271_v1 = vld [vmem:[#allocation2 + $0x58] sm:$0xff] }
  0x58   : > { %659 = vmatmul.mubr.f32.gmra.mxu1 %v302_v6 }
  0x59   : > { %528 = vmatmul.mubr.f32.gmra.mxu0 %v288_v4  ;;  %871 = vmatprep.mubr.msk.f32.mxu1 %vm244_vm0, %v307_v7 }
  0x5a   : > { %533 = vmatprep.mubr.f32.mxu0 %v293_v5 }
  0x5c   : > { %665 = vmatmul.mubr.f32.gmra.mxu1 %v306_v10 }
  0x5d   : > { %534 = vmatmul.mubr.f32.gmra.mxu0 %v292_v8 }
  0x5e   : > { %539 = vmatprep.mubr.f32.mxu0 %v297_v9  ;;  %v273_v9 = vld [vmem:[#allocation2 + $0x68] sm:$0xff] }
  0x61   : > { %540 = vmatmul.mubr.f32.gmra.mxu0 %v296_v11 }
  0x62   : > { %545 = vmatprep.mubr.f32.mxu0 %v301_v12 }
  0x65   : > { %546 = vmatmul.mubr.f32.gmra.mxu0 %v300_v13 }
  0x66   : > { %551 = vmatprep.mubr.f32.mxu0 %v305_v14 }
  0x69   : > { %552 = vmatmul.mubr.f32.gmra.mxu0 %v304_v15 }
 0x100   : > { %v624_v17 = vpop.f32.mrf.mxu1 }
 0x102   : > { %v626_v18 = vpop.f32.mrf.mxu1 }
 0x104   : > { %v630_v19 = vpop.f32.mrf.mxu1 }
 0x106   : > { %v632_v20 = vpop.f32.mrf.mxu1 }
 0x108   : > { %v636_v21 = vpop.f32.mrf.mxu1 }
 0x10a   : > { %v638_v23 = vpop.f32.mrf.mxu1 }
 0x10c   : > { %v642_v27 = vpop.f32.mrf.mxu1 }
 0x10d   : > { %v511_v22 = vpop.f32.mrf.mxu0 }
 0x10e   : > { %v625_v24 = vadd.f32 %v624_v17, %v511_v22  ;;  %v644_v30 = vpop.f32.mrf.mxu1 }
 0x10f   : > { %v513_v26 = vpop.f32.mrf.mxu0 }
 0x110   : > { %v627_v28 = vadd.f32 %v626_v18, %v513_v26  ;;  %722 = vst [vmem:[%s1368_s30] sm:$0xff] %v625_v24  ;;  %v648_v35 = vpop.f32.mrf.mxu1  ;;  %v275_v18 = vld [vmem:[#allocation2 + $0x78] sm:$0xff] }
 0x111   : > { %v517_v29 = vpop.f32.mrf.mxu0 }
 0x112   : > { %v672_v31 = vadd.f32 %v627_v28, %v261_v25  ;;  %v631_v32 = vadd.f32 %v630_v19, %v517_v29  ;;  %v650_v38 = vpop.f32.mrf.mxu1 }
 0x113   : > { %v519_v34 = vpop.f32.mrf.mxu0 }
 0x114   : > { %688 = vst.msk [vmem:[#allocation2 + $0x8] sm:$0xff] %vm244_vm0, %v672_v31  ;;  %v633_v36 = vadd.f32 %v632_v20, %v519_v34  ;;  %724 = vst [vmem:[%s1368_s30 + $0x10] sm:$0xff] %v631_v32  ;;  %v654_v43 = vpop.f32.mrf.mxu1 }
 0x115   : > { %v523_v37 = vpop.f32.mrf.mxu0 }
 0x116   : > { %v674_v39 = vadd.f32 %v633_v36, %v263_v33  ;;  %v637_v40 = vadd.f32 %v636_v21, %v523_v37  ;;  %v656_v51 = vpop.f32.mrf.mxu1 }
 0x117   : > { %v525_v42 = vpop.f32.mrf.mxu0 }
 0x118   : > { %690 = vst.msk [vmem:[#allocation2 + $0x18] sm:$0xff] %vm244_vm0, %v674_v39  ;;  %v639_v44 = vadd.f32 %v638_v23, %v525_v42  ;;  %726 = vst [vmem:[%s1368_s30 + $0x20] sm:$0xff] %v637_v40  ;;  %v660_v59 = vpop.f32.mrf.mxu1 }
 0x119   : > { %v529_v45 = vpop.f32.mrf.mxu0 }
 0x11a   : > { %v676_v46 = vadd.f32 %v639_v44, %v265_v41  ;;  %v643_v47 = vadd.f32 %v642_v27, %v529_v45  ;;  %v662_v3 = vpop.f32.mrf.mxu1 }
 0x11b   : > { %v707_v48 = vld [vmem:[#allocation2 + $0x8] sm:$0xff]  ;;  %v531_v50 = vpop.f32.mrf.mxu0 }
 0x11c   : > { %723 = vst.msk [vmem:[%s1368_s30 + $0x8] sm:$0xff] %vm244_vm0, %v707_v48  ;;  %692 = vst.msk [vmem:[#allocation2 + $0x28] sm:$0xff] %vm244_vm0, %v676_v46  ;;  %v645_v52 = vadd.f32 %v644_v30, %v531_v50  ;;  %v666_v11 = vpop.f32.mrf.mxu1 }
 0x11d   : > { %v535_v53 = vpop.f32.mrf.mxu0  ;;  %728 = vst [vmem:[%s1368_s30 + $0x30] sm:$0xff] %v643_v47 }
 0x11e   : > { %v678_v54 = vadd.f32 %v645_v52, %v267_v49  ;;  %v649_v55 = vadd.f32 %v648_v35, %v535_v53  ;;  %v668_v17 = vpop.f32.mrf.mxu1 }
 0x11f   : > { %v709_v56 = vld [vmem:[#allocation2 + $0x18] sm:$0xff]  ;;  %v537_v58 = vpop.f32.mrf.mxu0 }
 0x120   : > { %725 = vst.msk [vmem:[%s1368_s30 + $0x18] sm:$0xff] %vm244_vm0, %v709_v56  ;;  %694 = vst.msk [vmem:[#allocation2 + $0x38] sm:$0xff] %vm244_vm0, %v678_v54  ;;  %v651_v60 = vadd.f32 %v650_v38, %v537_v58 }
 0x121   : > { %v541_v61 = vpop.f32.mrf.mxu0  ;;  %730 = vst [vmem:[%s1368_s30 + $0x40] sm:$0xff] %v649_v55 }
 0x122   : > { %v680_v62 = vadd.f32 %v651_v60, %v269_v57  ;;  %v655_v63 = vadd.f32 %v654_v43, %v541_v61 }
 0x123   : > { %v711_v0 = vld [vmem:[#allocation2 + $0x28] sm:$0xff]  ;;  %v543_v2 = vpop.f32.mrf.mxu0 }
 0x124   : > { %727 = vst.msk [vmem:[%s1368_s30 + $0x28] sm:$0xff] %vm244_vm0, %v711_v0  ;;  %696 = vst.msk [vmem:[#allocation2 + $0x48] sm:$0xff] %vm244_vm0, %v680_v62  ;;  %v657_v4 = vadd.f32 %v656_v51, %v543_v2 }
 0x125   : > { %v547_v5 = vpop.f32.mrf.mxu0  ;;  %732 = vst [vmem:[%s1368_s30 + $0x50] sm:$0xff] %v655_v63 }
 0x126   : > { %v682_v6 = vadd.f32 %v657_v4, %v271_v1  ;;  %v661_v7 = vadd.f32 %v660_v59, %v547_v5 }
 0x127   : > { %v713_v8 = vld [vmem:[#allocation2 + $0x38] sm:$0xff]  ;;  %v549_v10 = vpop.f32.mrf.mxu0 }
 0x128   : > { %729 = vst.msk [vmem:[%s1368_s30 + $0x38] sm:$0xff] %vm244_vm0, %v713_v8  ;;  %698 = vst.msk [vmem:[#allocation2 + $0x58] sm:$0xff] %vm244_vm0, %v682_v6  ;;  %v663_v12 = vadd.f32 %v662_v3, %v549_v10 }
 0x129   : > { %v553_v13 = vpop.f32.mrf.mxu0  ;;  %734 = vst [vmem:[%s1368_s30 + $0x60] sm:$0xff] %v661_v7 }
 0x12a   : > { %v684_v14 = vadd.f32 %v663_v12, %v273_v9  ;;  %v667_v15 = vadd.f32 %v666_v11, %v553_v13 }
 0x12b   : > { %v715_v16 = vld [vmem:[#allocation2 + $0x48] sm:$0xff]  ;;  %v555_v19 = vpop.f32.mrf.mxu0 }
 0x12c   : > { %731 = vst.msk [vmem:[%s1368_s30 + $0x48] sm:$0xff] %vm244_vm0, %v715_v16  ;;  %700 = vst.msk [vmem:[#allocation2 + $0x68] sm:$0xff] %vm244_vm0, %v684_v14  ;;  %v669_v20 = vadd.f32 %v668_v17, %v555_v19 }
 0x12d   : > { %736 = vst [vmem:[%s1368_s30 + $0x70] sm:$0xff] %v667_v15 }
 0x12e   : > { %v686_v21 = vadd.f32 %v669_v20, %v275_v18 }
 0x12f   : > { %v717_v22 = vld [vmem:[#allocation2 + $0x58] sm:$0xff] }
 0x130   : > { %733 = vst.msk [vmem:[%s1368_s30 + $0x58] sm:$0xff] %vm244_vm0, %v717_v22  ;;  %702 = vst.msk [vmem:[#allocation2 + $0x78] sm:$0xff] %vm244_vm0, %v686_v21 }
 0x133   : > { %v719_v23 = vld [vmem:[#allocation2 + $0x68] sm:$0xff] }
 0x134   : > { %735 = vst.msk [vmem:[%s1368_s30 + $0x68] sm:$0xff] %vm244_vm0, %v719_v23 }
 0x137   : > { %v721_v24 = vld [vmem:[#allocation2 + $0x78] sm:$0xff] }
 0x138   : > { %737 = vst.msk [vmem:[%s1368_s30 + $0x78] sm:$0xff] %vm244_vm0, %v721_v24 }
 0x139 PF: > { %s12_s11 = sadd.s32 1, %s923_s11   ;;  %s1415_s9 = smov %s919_s10 }
 0x13a   : > { %p9_p5 = scmp.ge.s32.totalorder %s12_s11, 4   ;;  %s1416_s10 = smov %s1418_s12 }
 0x13c   :  { %11 = sbr.rel (!%p9_p5) target bundleno = 2 (0x2), region = 69 }

</bundles_post_ra>
